<compile_context>
chip_gen: v7x
topology: tpu7x:2x2x1
jax: 0.10.0
libtpu: 0.0.40
codegen_flags: <defaults>
</compile_context>

<pallas_src>
import jax
import jax.numpy as jnp
from jax.experimental import pallas as pl
from jax.experimental.pallas import tpu as pltpu

# ----- problem sizes (small, consistent with the module) --------------------
BATCH = 2
SEQ_LEN = 16          # n
DIM = 32              # model dim
HEADS = 4             # h
DIM_HEAD = 8          # d
K_LIN = 8             # Linformer projection length k
INNER = HEADS * DIM_HEAD          # 32
SCALE = DIM_HEAD ** (-0.5)
ROWS = BATCH * SEQ_LEN            # 32 flattened (b, n) rows
HK = HEADS * K_LIN                # 32 flattened (h, kk) logit columns

# ----- row offsets inside the single packed constant buffer (width 3*INNER) --
C_WQKV = 0                          # (DIM, 3*INNER)  fused [Wq*scale | Wk | Wv]
C_PKT = C_WQKV + DIM                # (B*K, B*S)      block-diag proj_k^T
C_PVT = C_PKT + BATCH * K_LIN       # (B*K, B*S)      block-diag proj_v^T
C_WOUT = C_PVT + BATCH * K_LIN      # (INNER, DIM)    output projection
C_BOUT = C_WOUT + INNER             # (ROWS, DIM)     bias, pre-broadcast over rows
C_GSUM = C_BOUT + ROWS              # (HK, HK)        per-head group-sum matrix
C_MASK = C_GSUM + HK                # (HK, INNER)     block-diag-over-heads mask
C_ROWS = C_MASK + HK                # 192 total rows
C_COLS = 3 * INNER                  # 96


# ----------------------------- Pallas kernel --------------------------------
def linformer_attn_kernel(x_ref, c_ref, o_ref):
    # ---- static slices of the single packed constant buffer (one DMA) ----
    w_qkv = c_ref[C_WQKV:C_WQKV + DIM, :]                        # (32, 96)
    pkt_bd = c_ref[C_PKT:C_PKT + BATCH * K_LIN, 0:ROWS]          # (16, 32)
    pvt_bd = c_ref[C_PVT:C_PVT + BATCH * K_LIN, 0:ROWS]          # (16, 32)
    w_out = c_ref[C_WOUT:C_WOUT + INNER, 0:DIM]                  # (32, 32)
    b_out = c_ref[C_BOUT:C_BOUT + ROWS, 0:DIM]                   # (32, 32) pre-broadcast bias
    gsum = c_ref[C_GSUM:C_GSUM + HK, 0:HK]                       # (32, 32)
    bd_mask = c_ref[C_MASK:C_MASK + HK, 0:INNER]                 # (32, 32)

    # ---- fused q/k/v projection over flattened (b, n) rows: one MXU matmul ----
    x = x_ref[...]                                               # (ROWS, DIM) = (32, 32)
    qkv = jnp.dot(x, w_qkv, preferred_element_type=jnp.float32)  # (32, 96)
    q = qkv[:, 0:INNER]                   # (32, 32), attention scale pre-folded into Wq
    k = qkv[:, INNER:2 * INNER]           # (32, 32)
    v = qkv[:, 2 * INNER:3 * INNER]       # (32, 32)

    # ---- Linformer sequence projection, both batches in one matmul per tensor ----
    # kp[b*K + kk, :] = sum_n proj_k[n, kk] * k[b*S + n, :]   (pkt_bd is block-diag over batch)
    kp = jnp.dot(pkt_bd, k, preferred_element_type=jnp.float32)  # (B*K, INNER) = (16, 32)
    vp = jnp.dot(pvt_bd, v, preferred_element_type=jnp.float32)  # (16, 32)
    # TODO(synk): nn.Dropout on k/v and on attn is identity in eval mode; no stochastic dropout.

    # ---- logits in the flat (h d) layout: one matmul per batch with a block-diag-over-heads RHS ----
    logits_parts = []
    for b in range(BATCH):                                       # unrolled (BATCH = 2)
        q_b = q[b * SEQ_LEN:(b + 1) * SEQ_LEN, :]                # (16, 32) sublane slice
        kp_b = kp[b * K_LIN:(b + 1) * K_LIN, :]                  # (8, 32)
        kp_bd = jnp.concatenate([kp_b] * HEADS, axis=0) * bd_mask  # (HK, INNER) block-diag
        # logits_b[n, h*K + kk] = sum_d q_b[n, h*D + d] * kp_b[kk, h*D + d]
        logits_parts.append(
            jnp.einsum('nd,md->nm', q_b, kp_bd, preferred_element_type=jnp.float32))
    logits = jnp.concatenate(logits_parts, axis=0)               # (ROWS, HK) = (32, 32)

    # ---- per-head softmax, staying flat: denominator via one matmul with gsum ----
    # Subtracting the per-row (all-heads) max gives the identical per-head softmax
    # (shift invariance within each head group) and the row max >= every head max,
    # so exp() cannot overflow.
    m_row = jnp.max(logits, axis=-1, keepdims=True)              # (32, 1)
    p = jnp.exp(logits - m_row)                                  # (32, 32)
    denom = jnp.dot(p, gsum, preferred_element_type=jnp.float32)  # per-head sums, broadcast in-group
    attn = p / denom + 1e-6                                      # exact divide; +1e-6 as in the module

    # ---- attention @ V with the same block-diag trick: ctx lands merged as (rows, h*d) ----
    ctx_parts = []
    for b in range(BATCH):
        attn_b = attn[b * SEQ_LEN:(b + 1) * SEQ_LEN, :]          # (16, 32)
        vp_b = vp[b * K_LIN:(b + 1) * K_LIN, :]                  # (8, 32)
        vp_bd = jnp.concatenate([vp_b] * HEADS, axis=0) * bd_mask  # (HK, INNER)
        ctx_parts.append(jnp.dot(attn_b, vp_bd, preferred_element_type=jnp.float32))
    ctx = jnp.concatenate(ctx_parts, axis=0)                     # (ROWS, INNER) = (32, 32)

    # ---- output projection + bias, direct (ROWS, DIM) store ----
    y = jnp.dot(ctx, w_out, preferred_element_type=jnp.float32) + b_out
    o_ref[...] = y.astype(o_ref.dtype)


# ------------------------------- wrapper -------------------------------------
def linformer_attention(x, wq, wkv, proj_k, proj_v, wout, bout):
    b, n, d = x.shape
    assert (b, n, d) == (BATCH, SEQ_LEN, DIM)
    dt = x.dtype

    # ---- constant preprocessing, all wrapper-side (free) ----
    w_qkv = jnp.concatenate([wq * SCALE, wkv], axis=1)                   # (DIM, 3*INNER)
    eye_b = jnp.eye(BATCH, dtype=dt)
    pkt_bd = jnp.kron(eye_b, proj_k.T.astype(dt))                        # (B*K, B*S)
    pvt_bd = jnp.kron(eye_b, proj_v.T.astype(dt))
    bout_full = jnp.broadcast_to(bout.reshape(1, DIM), (ROWS, DIM))      # pre-broadcast bias

    # head index of each flat (h, kk) column and each flat (h, d) column
    hk_head = jnp.arange(HK) // K_LIN
    in_head = jnp.arange(INNER) // DIM_HEAD
    bd_mask = (hk_head[:, None] == in_head[None, :]).astype(dt)          # (HK, INNER)
    gsum = (hk_head[:, None] == hk_head[None, :]).astype(dt)             # (HK, HK)

    # ---- pack every constant into ONE buffer -> 2 input DMAs total ----
    consts = jnp.zeros((C_ROWS, C_COLS), dtype=dt)
    consts = consts.at[C_WQKV:C_WQKV + DIM, :].set(w_qkv)
    consts = consts.at[C_PKT:C_PKT + BATCH * K_LIN, 0:ROWS].set(pkt_bd)
    consts = consts.at[C_PVT:C_PVT + BATCH * K_LIN, 0:ROWS].set(pvt_bd)
    consts = consts.at[C_WOUT:C_WOUT + INNER, 0:DIM].set(wout)
    consts = consts.at[C_BOUT:C_BOUT + ROWS, 0:DIM].set(bout_full)
    consts = consts.at[C_GSUM:C_GSUM + HK, 0:HK].set(gsum)
    consts = consts.at[C_MASK:C_MASK + HK, 0:INNER].set(bd_mask)

    x_flat = x.reshape(ROWS, DIM)   # contiguous -> free

    # No grid: a few KFLOPs of work, so per-grid-step overhead would dominate and
    # megacore sharding (v7x) cannot pay off.  If batch/seq grow: grid=(BATCH,) with
    # dimension_semantics=("parallel",), bf16 MXU operands on v6e/v7x, and block
    # sizes chosen for v7x's 64 MiB VMEM (explicit vmem_limit_bytes).
    out_flat = pl.pallas_call(
        linformer_attn_kernel,
        out_shape=jax.ShapeDtypeStruct((ROWS, DIM), dt),
        in_specs=[pl.BlockSpec(memory_space=pltpu.MemorySpace.VMEM),
                  pl.BlockSpec(memory_space=pltpu.MemorySpace.VMEM)],
        out_specs=pl.BlockSpec(memory_space=pltpu.MemorySpace.VMEM),
    )(x_flat, consts)

    return out_flat.reshape(b, n, d)   # free reshape back outside the kernel


# ----------------------- pure-JAX reference (for checking) -------------------
def reference(x, wq, wkv, pk, pv, wout, bout):
    b, n, _ = x.shape
    q = x @ wq
    kv = x @ wkv
    k_full, v_full = kv[..., :INNER], kv[..., INNER:]
    kp = jnp.einsum('bnd,nk->bkd', k_full, pk)
    vp = jnp.einsum('bnd,nk->bkd', v_full, pv)
    qh = q.reshape(b, n, HEADS, DIM_HEAD).transpose(0, 2, 1, 3)
    kh = kp.reshape(b, K_LIN, HEADS, DIM_HEAD).transpose(0, 2, 1, 3)
    vh = vp.reshape(b, K_LIN, HEADS, DIM_HEAD).transpose(0, 2, 1, 3)
    attn = jnp.einsum('bhnd,bhkd->bhnk', qh, kh) * SCALE
    attn = jax.nn.softmax(attn, axis=-1) + 1e-6
    out = jnp.einsum('bhnk,bhkd->bhnd', attn, vh)
    out = out.transpose(0, 2, 1, 3).reshape(b, n, INNER)
    return out @ wout + bout


# --------------------------------- main --------------------------------------
if __name__ == "__main__":
    key = jax.random.PRNGKey(0)
    kx, kq, kkv, kpk, kpv, kwo, kbo = jax.random.split(key, 7)

    x = jax.random.normal(kx, (BATCH, SEQ_LEN, DIM), dtype=jnp.float32)

    # Deterministic parameter init (synthetic; shapes follow the module's __init__).
    wq = 0.05 * jax.random.normal(kq, (DIM, INNER), dtype=jnp.float32)        # to_q
    wkv = 0.05 * jax.random.normal(kkv, (DIM, 2 * INNER), dtype=jnp.float32)  # to_kv
    proj_k = jax.random.normal(kpk, (SEQ_LEN, K_LIN), dtype=jnp.float32)      # torch.randn
    proj_v = jax.random.normal(kpv, (SEQ_LEN, K_LIN), dtype=jnp.float32)      # torch.randn
    wout = 0.05 * jax.random.normal(kwo, (INNER, DIM), dtype=jnp.float32)     # to_out.weight
    bout = 0.05 * jax.random.normal(kbo, (1, DIM), dtype=jnp.float32)         # to_out.bias

    attn_fn = jax.jit(linformer_attention)
    out = jax.block_until_ready(attn_fn(x, wq, wkv, proj_k, proj_v, wout, bout))
    ref = jax.block_until_ready(reference(x, wq, wkv, proj_k, proj_v, wout, bout))

    assert out.shape == (BATCH, SEQ_LEN, DIM)
    # Exact divide in the softmax -> the original tight tolerance is restored.
    assert jnp.allclose(out, ref, atol=1e-4, rtol=1e-4), "mismatch vs reference"

    print("KERNEL_OK")
</pallas_src>

<mosaic_0001>
module attributes {stable_mosaic.version = 11 : i64} {
  func.func @linformer_attn_kernel(%arg0: memref<32x32xf32, #tpu.memory_space<vmem>>, %arg1: memref<192x96xf32, #tpu.memory_space<vmem>>, %arg2: memref<32x32xf32, #tpu.memory_space<vmem>>) attributes {dimension_semantics = [], scalar_prefetch = 0 : i64, scratch_operands = 0 : i64, tpu.core_type = #tpu.core_type<tc>} {
    %c0 = arith.constant 0 : index
    %c0_0 = arith.constant 0 : index
    %0 = vector.load %arg1[%c0, %c0_0] : memref<192x96xf32, #tpu.memory_space<vmem>>, vector<32x96xf32>
    %c32 = arith.constant 32 : index
    %c0_1 = arith.constant 0 : index
    %1 = vector.load %arg1[%c32, %c0_1] : memref<192x96xf32, #tpu.memory_space<vmem>>, vector<16x32xf32>
    %c48 = arith.constant 48 : index
    %c0_2 = arith.constant 0 : index
    %2 = vector.load %arg1[%c48, %c0_2] : memref<192x96xf32, #tpu.memory_space<vmem>>, vector<16x32xf32>
    %c64 = arith.constant 64 : index
    %c0_3 = arith.constant 0 : index
    %3 = vector.load %arg1[%c64, %c0_3] : memref<192x96xf32, #tpu.memory_space<vmem>>, vector<32x32xf32>
    %c96 = arith.constant 96 : index
    %c0_4 = arith.constant 0 : index
    %4 = vector.load %arg1[%c96, %c0_4] : memref<192x96xf32, #tpu.memory_space<vmem>>, vector<32x32xf32>
    %c128 = arith.constant 128 : index
    %c0_5 = arith.constant 0 : index
    %5 = vector.load %arg1[%c128, %c0_5] : memref<192x96xf32, #tpu.memory_space<vmem>>, vector<32x32xf32>
    %c160 = arith.constant 160 : index
    %c0_6 = arith.constant 0 : index
    %6 = vector.load %arg1[%c160, %c0_6] : memref<192x96xf32, #tpu.memory_space<vmem>>, vector<32x32xf32>
    %c0_7 = arith.constant 0 : index
    %c0_8 = arith.constant 0 : index
    %7 = vector.load %arg0[%c0_7, %c0_8] : memref<32x32xf32, #tpu.memory_space<vmem>>, vector<32x32xf32>
    %cst = arith.constant dense<0.000000e+00> : vector<32x96xf32>
    %8 = tpu.matmul %7, %0, %cst {dimension_numbers = #tpu.dot_dimension_numbers<[1], [0], [0], [1], [0, 0, 1, 1], [], []>} : vector<32x32xf32>, vector<32x96xf32>, vector<32x96xf32> -> vector<32x96xf32>
    %9 = vector.extract_strided_slice %8 {offsets = [0, 0], sizes = [32, 32], strides = [1, 1]} : vector<32x96xf32> to vector<32x32xf32>
    %10 = vector.extract_strided_slice %8 {offsets = [0, 32], sizes = [32, 32], strides = [1, 1]} : vector<32x96xf32> to vector<32x32xf32>
    %11 = vector.extract_strided_slice %8 {offsets = [0, 64], sizes = [32, 32], strides = [1, 1]} : vector<32x96xf32> to vector<32x32xf32>
    %cst_9 = arith.constant dense<0.000000e+00> : vector<16x32xf32>
    %12 = tpu.matmul %1, %10, %cst_9 {dimension_numbers = #tpu.dot_dimension_numbers<[1], [0], [0], [1], [0, 0, 1, 1], [], []>} : vector<16x32xf32>, vector<32x32xf32>, vector<16x32xf32> -> vector<16x32xf32>
    %cst_10 = arith.constant dense<0.000000e+00> : vector<16x32xf32>
    %13 = tpu.matmul %2, %11, %cst_10 {dimension_numbers = #tpu.dot_dimension_numbers<[1], [0], [0], [1], [0, 0, 1, 1], [], []>} : vector<16x32xf32>, vector<32x32xf32>, vector<16x32xf32> -> vector<16x32xf32>
    %14 = vector.extract_strided_slice %9 {offsets = [0, 0], sizes = [16, 32], strides = [1, 1]} : vector<32x32xf32> to vector<16x32xf32>
    %15 = vector.extract_strided_slice %12 {offsets = [0, 0], sizes = [8, 32], strides = [1, 1]} : vector<16x32xf32> to vector<8x32xf32>
    %16 = tpu.concatenate %15, %15, %15, %15 in 0 : vector<8x32xf32>, vector<8x32xf32>, vector<8x32xf32>, vector<8x32xf32> -> vector<32x32xf32>
    %17 = arith.mulf %16, %6 : vector<32x32xf32>
    "tpu.trace_start"() <{level = 10 : i32, message = "nd,md->nm"}> : () -> ()
    %cst_11 = arith.constant dense<0.000000e+00> : vector<16x32xf32>
    %18 = tpu.matmul %14, %17, %cst_11 {dimension_numbers = #tpu.dot_dimension_numbers<[1], [1], [0], [0], [0, 0, 1, 0], [], []>} : vector<16x32xf32>, vector<32x32xf32>, vector<16x32xf32> -> vector<16x32xf32>
    "tpu.trace_stop"() : () -> ()
    %19 = vector.extract_strided_slice %9 {offsets = [16, 0], sizes = [16, 32], strides = [1, 1]} : vector<32x32xf32> to vector<16x32xf32>
    %20 = vector.extract_strided_slice %12 {offsets = [8, 0], sizes = [8, 32], strides = [1, 1]} : vector<16x32xf32> to vector<8x32xf32>
    %21 = tpu.concatenate %20, %20, %20, %20 in 0 : vector<8x32xf32>, vector<8x32xf32>, vector<8x32xf32>, vector<8x32xf32> -> vector<32x32xf32>
    %22 = arith.mulf %21, %6 : vector<32x32xf32>
    "tpu.trace_start"() <{level = 10 : i32, message = "nd,md->nm"}> : () -> ()
    %cst_12 = arith.constant dense<0.000000e+00> : vector<16x32xf32>
    %23 = tpu.matmul %19, %22, %cst_12 {dimension_numbers = #tpu.dot_dimension_numbers<[1], [1], [0], [0], [0, 0, 1, 0], [], []>} : vector<16x32xf32>, vector<32x32xf32>, vector<16x32xf32> -> vector<16x32xf32>
    "tpu.trace_stop"() : () -> ()
    %24 = tpu.concatenate %18, %23 in 0 : vector<16x32xf32>, vector<16x32xf32> -> vector<32x32xf32>
    %cst_13 = arith.constant dense<0xFF800000> : vector<32xf32>
    %25 = vector.multi_reduction <maximumf>, %24, %cst_13 [1] : vector<32x32xf32> to vector<32xf32>
    %26 = vector.shape_cast %25 : vector<32xf32> to vector<32x1xf32>
    %27 = vector.broadcast %26 : vector<32x1xf32> to vector<32x32xf32>
    %28 = arith.subf %24, %27 : vector<32x32xf32>
    %29 = math.exp %28 : vector<32x32xf32>
    %cst_14 = arith.constant dense<0.000000e+00> : vector<32x32xf32>
    %30 = tpu.matmul %29, %5, %cst_14 {dimension_numbers = #tpu.dot_dimension_numbers<[1], [0], [0], [1], [0, 0, 1, 1], [], []>} : vector<32x32xf32>, vector<32x32xf32>, vector<32x32xf32> -> vector<32x32xf32>
    %31 = arith.divf %29, %30 : vector<32x32xf32>
    %cst_15 = arith.constant 9.99999997E-7 : f32
    %32 = vector.broadcast %cst_15 : f32 to vector<32x32xf32>
    %33 = arith.addf %31, %32 : vector<32x32xf32>
    %34 = vector.extract_strided_slice %33 {offsets = [0, 0], sizes = [16, 32], strides = [1, 1]} : vector<32x32xf32> to vector<16x32xf32>
    %35 = vector.extract_strided_slice %13 {offsets = [0, 0], sizes = [8, 32], strides = [1, 1]} : vector<16x32xf32> to vector<8x32xf32>
    %36 = tpu.concatenate %35, %35, %35, %35 in 0 : vector<8x32xf32>, vector<8x32xf32>, vector<8x32xf32>, vector<8x32xf32> -> vector<32x32xf32>
    %37 = arith.mulf %36, %6 : vector<32x32xf32>
    %cst_16 = arith.constant dense<0.000000e+00> : vector<16x32xf32>
    %38 = tpu.matmul %34, %37, %cst_16 {dimension_numbers = #tpu.dot_dimension_numbers<[1], [0], [0], [1], [0, 0, 1, 1], [], []>} : vector<16x32xf32>, vector<32x32xf32>, vector<16x32xf32> -> vector<16x32xf32>
    %39 = vector.extract_strided_slice %33 {offsets = [16, 0], sizes = [16, 32], strides = [1, 1]} : vector<32x32xf32> to vector<16x32xf32>
    %40 = vector.extract_strided_slice %13 {offsets = [8, 0], sizes = [8, 32], strides = [1, 1]} : vector<16x32xf32> to vector<8x32xf32>
    %41 = tpu.concatenate %40, %40, %40, %40 in 0 : vector<8x32xf32>, vector<8x32xf32>, vector<8x32xf32>, vector<8x32xf32> -> vector<32x32xf32>
    %42 = arith.mulf %41, %6 : vector<32x32xf32>
    %cst_17 = arith.constant dense<0.000000e+00> : vector<16x32xf32>
    %43 = tpu.matmul %39, %42, %cst_17 {dimension_numbers = #tpu.dot_dimension_numbers<[1], [0], [0], [1], [0, 0, 1, 1], [], []>} : vector<16x32xf32>, vector<32x32xf32>, vector<16x32xf32> -> vector<16x32xf32>
    %44 = tpu.concatenate %38, %43 in 0 : vector<16x32xf32>, vector<16x32xf32> -> vector<32x32xf32>
    %cst_18 = arith.constant dense<0.000000e+00> : vector<32x32xf32>
    %45 = tpu.matmul %44, %3, %cst_18 {dimension_numbers = #tpu.dot_dimension_numbers<[1], [0], [0], [1], [0, 0, 1, 1], [], []>} : vector<32x32xf32>, vector<32x32xf32>, vector<32x32xf32> -> vector<32x32xf32>
    %46 = arith.addf %45, %4 : vector<32x32xf32>
    %c0_19 = arith.constant 0 : index
    %c0_20 = arith.constant 0 : index
    %47 = vector.load %arg2[%c0_19, %c0_20] : memref<32x32xf32, #tpu.memory_space<vmem>>, vector<32x32xf32>
    tpu.vector_store %arg2[%c0_19, %c0_20], %46 {strides = array<i32>} : memref<32x32xf32, #tpu.memory_space<vmem>>, vector<32x32xf32>,
    return
  }
}

</mosaic_0001>

<bundles_post_ra>
// kernel: linformer_attention.1
= control target key start
LH: loop header
LB: loop body
LE: loop exit
PB: predicated region body
PF: predicated region fallthrough
CT: control target
= control target key end

     0   :  { %vm40_vm0 = vcmask 261120   ;;  %s1461_s0 = inlined_call_operand.vmem [shape: f32[32,32], index: 0, kind: input, shape index: {}]   ;;  %s1462_s1 = inlined_call_operand.vmem [shape: f32[192,96], index: 1, kind: input, shape index: {}]   ;;  %s1463_s2 = inlined_call_operand.hbm [shape: f32[32,32], index: 2, kind: output, shape index: {}]  }
   0x1   :  { %v12_v0 = vld [vmem:[%s1462_s1] sm:$0xff]  ;;  %v13_v1 = vld [vmem:[%s1462_s1 + $0x8] sm:$0xff]  ;;  %v14_v2 = vld [vmem:[%s1462_s1 + $0x10] sm:$0xff] }
   0x2   :  { %v1138_v3 = vpack.c.bf16 %v13_v1, %v12_v0  ;;  %v15_v4 = vld [vmem:[%s1462_s1 + $0x18] sm:$0xff]  ;;  %v36_v5 = vld [vmem:[%s1461_s0] sm:$0xff] }
   0x3   :  { %v1142_v6 = vpack.c.bf16 %v15_v4, %v14_v2  ;;  %1038 = vmatprep.mubr.msk.f32.mxu1 %vm40_vm0, %v36_v5 }
   0x4   :  { %7 = vsyncpa [#allocation3], 0  ;;  %1139 = vmatprep.subr.bf16.mxu1 %v1138_v3  ;;  %v37_v7 = vld [vmem:[%s1461_s0 + $0x8] sm:$0xff]  ;;  %v38_v8 = vld [vmem:[%s1461_s0 + $0x10] sm:$0xff]  ;;  %s1284_s29 = smov 96   ;;  %s1285_s9 = smov [#allocation2]  }
   0x5   :  { %1141 = vmatpush3.bf16.msra.mxu1 %v1138_v3  ;;  %v39_v9 = vld [vmem:[%s1461_s0 + $0x18] sm:$0xff]  ;;  %v16_v11 = vld [vmem:[%s1462_s1 + $0x20] sm:$0xff]  ;;  %v18_v12 = vld [vmem:[%s1462_s1 + $0x30] sm:$0xff]  ;;  %s1283_s0 = smov 64   ;;  %s927_s10 = sshll.u32 %s1285_s9, 4  ;;  %s928_s10 = int_to_ptr.vmem [resolvable:$true] %s927_s10 }
   0x6   :  { %1143 = vmatprep.subr.bf16.mxu1 %v1142_v6  ;;  %1063 = vmatprep.mubr.msk.f32.mxu0 %vm40_vm0, %v18_v12  ;;  %v17_v34 = vld [vmem:[%s1462_s1 + $0x28] sm:$0xff]  ;;  %v19_v35 = vld [vmem:[%s1462_s1 + $0x38] sm:$0xff]  ;;  %v32_v36 = vld [vmem:[%s1462_s1 + $0xa0] sm:$0xff]  ;;  %s1259_s11 = scalar_lea.vmem %s928_s10, 512  ;;  %p1264_p1 = scmp.lt.s32.totalorder %s928_s10, %s928_s10 }
   0x7   :  { %v33_v37 = vld [vmem:[%s1462_s1 + $0xa8] sm:$0xff]  ;;  %v34_v38 = vld [vmem:[%s1462_s1 + $0xb0] sm:$0xff]  ;;  %v35_v39 = vld [vmem:[%s1462_s1 + $0xb8] sm:$0xff]  ;;  %p1260_p0 = scmp.ne.s32.totalorder %s928_s10, %s1259_s11  ;;  %p1265_p2 = scmp.lt.s32.totalorder %s1259_s11, %s1259_s11 }
   0x8   :  { %vm1369_vm1 = vmpackc.low %vm40_vm0, %vm40_vm0  ;;  %v28_v61 = vld [vmem:[%s1462_s1 + $0x80] sm:$0xff]  ;;  %v29_v62 = vld [vmem:[%s1462_s1 + $0x88] sm:$0xff] }
   0x9   :  { %1145 = vmatpush3.bf16.msra.mxu1 %v1142_v6  ;;  %v1186_v0 = vpack.c.bf16 %v29_v62, %v28_v61  ;;  %v30_v3 = vld [vmem:[%s1462_s1 + $0x90] sm:$0xff]  ;;  %v31_v4 = vld [vmem:[%s1462_s1 + $0x98] sm:$0xff]  ;;  %v25_v61 = vld [vmem:[%s1462_s1 + $0x68] sm:$0xff]  ;;  %p1266_p3 = por %p1265_p2, %p1264_p1 }
   0xa   :  { %v24_v62 = vld [vmem:[%s1462_s1 + $0x60] sm:$0xff] }
   0xb   :  { %p1267_p4 = pnand %p1266_p3, %p1260_p0 }
   0xc   :  { %1039 = vmatmul.mubr.msk.f32.vlgmr.msra.gmra.mrb[0].mxu1 %vm40_vm0, %v37_v7 }
   0xd   :  { %1041 = vmatprep.mubr.msk.f32.mxu1 %vm40_vm0, %v38_v8  ;;  %v1190_v8 = vpack.c.bf16 %v31_v4, %v30_v3  ;;  %v27_v3 = vld [vmem:[%s1462_s1 + $0x78] sm:$0xff]  ;;  %v26_v4 = vld [vmem:[%s1462_s1 + $0x70] sm:$0xff] }
  0x10   :  { %1042 = vmatmul.mubr.msk.f32.gmra.mrb[2].mxu1 %vm40_vm0, %v39_v9 }
  0x11   :  { %1052 = vmatprep.mubr.msk.f32.mxu1 %vm40_vm0, %v16_v11 }
  0xdf   :  { %v1331_v10 = vpop.f32.mrb[0].mxu1 }
  0xe0   :  { %v119_v13 = vpop.f32.mrb[1].mxu1 }
  0xe1   :  { %v1233_v14 = vpack.i.bf16 %v1331_v10, %v119_v13 }
  0xe3   :  { %1234 = vrot.lane.b32.xlu1 %v1233_v14, %s1283_s0  ;;  %1224 = vrot.lane.b32.xlu0 %v1233_v14, %s1284_s29  ;;  %v1342_v15 = vpop.f32.mrb[2].mxu1 }
  0xe4   :  { %v129_v16 = vpop.f32.mrb[3].mxu1 }
  0xe5   :  { %v1238_v17 = vpack.i.bf16 %v1342_v15, %v129_v16 }
  0xe7   :  { %1239 = vrot.lane.b32.xlu1 %v1238_v17, %s1283_s0  ;;  %1229 = vrot.lane.b32.xlu0 %v1238_v17, %s1284_s29 }
 0x155   :  { %v1235_v18 = vpop.permute.xlu1 %1234  ;;  %v1225_v19 = vpop.permute.xlu0 %1224 }
 0x156   :  { %v1237_v20 = vunpack.i.h.bf16 %v1235_v18  ;;  %v1236_v21 = vunpack.i.l.bf16 %v1235_v18  ;;  %v1227_v22 = vunpack.i.h.bf16 %v1225_v19  ;;  %v1226_v23 = vunpack.i.l.bf16 %v1225_v19 }
 0x158   :  { %v1146_v24 = vpack.c.bf16 %v1227_v22, %v1226_v23  ;;  %v1154_v25 = vpack.c.bf16 %v1237_v20, %v1236_v21 }
 0x159   :  { %v1240_v26 = vpop.permute.xlu1 %1239  ;;  %v1230_v27 = vpop.permute.xlu0 %1229 }
 0x15a   :  { %v1242_v28 = vunpack.i.h.bf16 %v1240_v26  ;;  %v1241_v29 = vunpack.i.l.bf16 %v1240_v26  ;;  %v1232_v30 = vunpack.i.h.bf16 %v1230_v27  ;;  %v1231_v31 = vunpack.i.l.bf16 %v1230_v27  ;;  %1147 = vmatprep.subr.bf16.mxu1 %v1146_v24  ;;  %1155 = vmatprep.subr.bf16.mxu0 %v1154_v25 }
 0x15b   :  { %1149 = vmatpush3.bf16.msra.mxu1 %v1146_v24  ;;  %1157 = vmatpush3.bf16.msra.mxu0 %v1154_v25 }
 0x15c   :  { %v1158_v32 = vpack.c.bf16 %v1242_v28, %v1241_v29  ;;  %v1150_v33 = vpack.c.bf16 %v1232_v30, %v1231_v31 }
 0x15e   :  { %1151 = vmatprep.subr.bf16.mxu1 %v1150_v33  ;;  %1159 = vmatprep.subr.bf16.mxu0 %v1158_v32 }
 0x15f   :  { %1153 = vmatpush3.bf16.msra.mxu1 %v1150_v33  ;;  %1161 = vmatpush3.bf16.msra.mxu0 %v1158_v32 }
 0x162   :  { %1053 = vmatmul.mubr.msk.f32.vlgmr.msra.gmra.mrb[4].mxu1 %vm40_vm0, %v17_v34  ;;  %1064 = vmatmul.mubr.msk.f32.vlgmr.msra.gmra.mrb[0].mxu0 %vm40_vm0, %v19_v35  ;;  %v20_v35 = vld [vmem:[%s1462_s1 + $0x40] sm:$0xff] }
 0x163   :  { %1074 = vmatprep.mubr.msk.f32.mxu1 %vm40_vm0, %v119_v13  ;;  %1085 = vmatprep.mubr.msk.f32.mxu0 %vm40_vm0, %v129_v16 }
 0x235   :  { %v1054_v40 = vpop.f32.mrb[4].mxu1  ;;  %v1065_v41 = vpop.f32.mrb[0].mxu0 }
 0x236   :  { %v423_v42 = vmul.f32 %v1054_v40, %v32_v36  ;;  %v424_v43 = vmul.f32 %v1054_v40, %v33_v37  ;;  %v425_v44 = vmul.f32 %v1054_v40, %v34_v38  ;;  %v426_v45 = vmul.f32 %v1054_v40, %v35_v39  ;;  %v226_v46 = vpop.f32.mrb[5].mxu1  ;;  %v319_v47 = vpop.f32.mrb[1].mxu0 }
 0x237   :  { %v328_v48 = vmul.f32 %v226_v46, %v32_v36  ;;  %v329_v49 = vmul.f32 %v226_v46, %v33_v37  ;;  %v330_v50 = vmul.f32 %v226_v46, %v34_v38  ;;  %v331_v51 = vmul.f32 %v226_v46, %v35_v39  ;;  %v22_v46 = vld [vmem:[%s1462_s1 + $0x50] sm:$0xff] }
 0x238   :  { %v1174_v53 = vpack.c.bf16 %v424_v43, %v423_v42  ;;  %v738_v55 = vmul.f32 %v1065_v41, %v34_v38  ;;  %v739_v56 = vmul.f32 %v1065_v41, %v35_v39  ;;  %v1180_v57 = vpack.c.bf16 %v426_v45, %v425_v44 }
 0x239   :  { %v1162_v54 = vpack.c.bf16 %v329_v49, %v328_v48  ;;  %v1168_v58 = vpack.c.bf16 %v331_v51, %v330_v50  ;;  %v651_v59 = vmul.f32 %v319_v47, %v32_v36  ;;  %v652_v60 = vmul.f32 %v319_v47, %v33_v37 }
 0x23a   :  { %1176 = vmatprep.subr.msk.bf16.mxu0 %vm1369_vm1, %v1174_v53  ;;  %v653_v1 = vmul.f32 %v319_v47, %v34_v38  ;;  %v654_v2 = vmul.f32 %v319_v47, %v35_v39  ;;  %v736_v6 = vmul.f32 %v1065_v41, %v32_v36  ;;  %v737_v7 = vmul.f32 %v1065_v41, %v33_v37  ;;  %v21_v36 = vld [vmem:[%s1462_s1 + $0x48] sm:$0xff]  ;;  %v23_v47 = vld [vmem:[%s1462_s1 + $0x58] sm:$0xff] }
 0x23b   :  { %1164 = vmatprep.subr.msk.bf16.mxu1 %vm1369_vm1, %v1162_v54  ;;  %1179 = vmatpush3.bf16.xpose.msk.msra.mxu0 %vm1369_vm1, %v1174_v53  ;;  %v1194_v63 = vpack.c.bf16 %v652_v60, %v651_v59  ;;  %v1206_v11 = vpack.c.bf16 %v739_v56, %v738_v55  ;;  %v1210_v37 = vpack.c.bf16 %v21_v36, %v20_v35 }
 0x23c   :  { %1167 = vmatpush3.bf16.xpose.msk.msra.mxu1 %vm1369_vm1, %v1162_v54  ;;  %1182 = vmatprep.subr.msk.bf16.mxu0 %vm1369_vm1, %v1180_v57  ;;  %v1198_v5 = vpack.c.bf16 %v654_v2, %v653_v1  ;;  %v1202_v9 = vpack.c.bf16 %v737_v7, %v736_v6  ;;  %v1214_v50 = vpack.c.bf16 %v23_v47, %v22_v46 }
 0x23d   :  { %1170 = vmatprep.subr.msk.bf16.mxu1 %vm1369_vm1, %v1168_v58 }
 0x243   :  { %1185 = vmatpush3.bf16.xpose.msk.msra.mxu0 %vm1369_vm1, %v1180_v57 }
 0x244   :  { %1173 = vmatpush3.bf16.xpose.msk.msra.mxu1 %vm1369_vm1, %v1168_v58  ;;  %1195 = vmatprep.subr.bf16.mxu0 %v1194_v63 }
 0x245   :  { %1187 = vmatprep.subr.bf16.mxu1 %v1186_v0 }
 0x24a   :  { %1086 = vmatmul.mubr.msk.f32.vlgmr.msra.gmra.mrb[2].mxu0 %vm40_vm0, %v1342_v15 }
 0x24b   :  { %1075 = vmatmul.mubr.msk.f32.vlgmr.msra.gmra.mrb[6].mxu1 %vm40_vm0, %v1331_v10  ;;  %1197 = vmatpush3.bf16.msra.mxu0 %v1194_v63 }
 0x24c   :  { %1189 = vmatpush3.bf16.msra.mxu1 %v1186_v0  ;;  %1199 = vmatprep.subr.bf16.mxu0 %v1198_v5 }
 0x24d   :  { %1191 = vmatprep.subr.bf16.mxu1 %v1190_v8 }
 0x24f   :  { %1201 = vmatpush3.bf16.msra.mxu0 %v1198_v5 }
 0x250   :  { %1193 = vmatpush3.bf16.msra.mxu1 %v1190_v8  ;;  %1211 = vmatprep.subr.bf16.mxu0 %v1210_v37 }
 0x251   :  { %1203 = vmatprep.subr.bf16.mxu1 %v1202_v9 }
 0x31d   :  { %v1087_v12 = vpop.f32.mrb[2].mxu0 }
 0x31e   :  { %v1076_v13 = vpop.f32.mrb[6].mxu1  ;;  %v509_v14 = vpop.f32.mrb[3].mxu0  ;;  %v527_v18 = vsel %vm40_vm0, %v1087_v12, -inf }
 0x31f   :  { %v414_v16 = vpop.f32.mrb[7].mxu1  ;;  %v521_v17 = vsel %vm40_vm0, %v1076_v13, -inf  ;;  %v524_v10 = vsel %vm40_vm0, %v509_v14, -inf }
 0x320   :  { %522 = vmax.xlane.f32.xlu1 %v521_v17  ;;  %v518_v15 = vsel %vm40_vm0, %v414_v16, -inf }
 0x321   :  { %519 = vmax.xlane.f32.xlu0 %v518_v15 }
 0x325   :  { %525 = vmax.xlane.f32.xlu0 %v524_v10 }
 0x329   :  { %528 = vmax.xlane.f32.xlu0 %v527_v18 }
 0x3ad   :  { %v523_v19 = vpop.xlane.xlu1 %522 }
 0x3ae   :  { %v531_v20 = vsub.f32 %v1076_v13, %v523_v19  ;;  %v520_v21 = vpop.xlane.xlu0 %519 }
 0x3af   :  { %v530_v22 = vsub.f32 %v414_v16, %v520_v21 }
 0x3b0   :  { %v536_v23 = vmul.f32 1.442695, %v531_v20 }
 0x3b1   :  { %v534_v24 = vmul.f32 1.442695, %v530_v22 }
 0x3b2   :  { %v526_v25 = vpop.xlane.xlu0 %525 }
 0x3b3   :  { %1243 = vpow2.f32 %v534_v24  ;;  %v532_v26 = vsub.f32 %v509_v14, %v526_v25 }
 0x3b4   :  { %1245 = vpow2.f32 %v536_v23 }
 0x3b5   :  { %v538_v27 = vmul.f32 1.442695, %v532_v26 }
 0x3b6   :  { %v529_v28 = vpop.xlane.xlu0 %528 }
 0x3b7   :  { %1247 = vpow2.f32 %v538_v27  ;;  %v533_v29 = vsub.f32 %v1087_v12, %v529_v28 }
 0x3b9   :  { %v540_v30 = vmul.f32 1.442695, %v533_v29 }
 0x3bb   :  { %1249 = vpow2.f32 %v540_v30 }
 0x3bd   :  { %v1244_v31 = vpop.eup %1243 }
 0x3be   :  { %v1246_v32 = vpop.eup %1245  ;;  %1096 = vmatprep.mubr.msk.f32.mxu1 %vm40_vm0, %v1244_v31 }
 0x3bf   :  { %1097 = vmatmul.mubr.msk.f32.vlgmr.msra.gmra.mrb[8].mxu1 %vm40_vm0, %v1246_v32 }
 0x3c0   :  { %1205 = vmatpush3.bf16.msra.mxu1 %v1202_v9 }
 0x3c1   :  { %v1248_v33 = vpop.eup %1247  ;;  %1207 = vmatprep.subr.bf16.mxu1 %v1206_v11 }
 0x3c2   :  { %1099 = vmatprep.mubr.msk.f32.mxu1 %vm40_vm0, %v1248_v33 }
 0x3c4   :  { %1209 = vmatpush3.bf16.msra.mxu1 %v1206_v11 }
 0x3c5   :  { %v1250_v34 = vpop.eup %1249 }
 0x3c6   :  { %1100 = vmatmul.mubr.msk.f32.gmra.mrb[10].mxu1 %vm40_vm0, %v1250_v34 }
 0x492   :  { %v1098_v38 = vpop.f32.mrb[8].mxu1 }
 0x493   :  { %1251 = vrcp.f32 %v1098_v38  ;;  %v620_v39 = vpop.f32.mrb[9].mxu1 }
 0x494   :  { %1253 = vrcp.f32 %v620_v39 }
 0x499   :  { %v1101_v40 = vpop.f32.mrb[10].mxu1 }
 0x49a   :  { %1255 = vrcp.f32 %v1101_v40  ;;  %v630_v41 = vpop.f32.mrb[11].mxu1 }
 0x49b   :  { %1257 = vrcp.f32 %v630_v41 }
 0x49d   :  { %v1252_v42 = vpop.eup %1251 }
 0x49e   :  { %v1254_v43 = vpop.eup %1253  ;;  %v642_v44 = vmul.f32 %v1252_v42, %v1246_v32 }
 0x49f   :  { %v640_v45 = vmul.f32 %v1254_v43, %v1244_v31 }
 0x4a0   :  { %v648_v49 = vadd.f32 1e-06, %v642_v44 }
 0x4a1   :  { %v647_v48 = vadd.f32 1e-06, %v640_v45 }
 0x4a3   :  { %1110 = vmatprep.mubr.msk.f32.mxu0 %vm40_vm0, %v647_v48 }
 0x4a4   :  { %v1256_v51 = vpop.eup %1255  ;;  %1111 = vmatmul.mubr.msk.f32.vlgmr.msra.gmra.mrb[4].mxu0 %vm40_vm0, %v648_v49 }
 0x4a5   :  { %v1258_v52 = vpop.eup %1257  ;;  %v646_v53 = vmul.f32 %v1256_v51, %v1250_v34  ;;  %1213 = vmatpush3.bf16.msra.mxu0 %v1210_v37 }
 0x4a6   :  { %v644_v54 = vmul.f32 %v1258_v52, %v1248_v33  ;;  %1215 = vmatprep.subr.bf16.mxu0 %v1214_v50 }
 0x4a7   :  { %v650_v56 = vadd.f32 1e-06, %v646_v53 }
 0x4a8   :  { %v649_v55 = vadd.f32 1e-06, %v644_v54 }
 0x4a9   :  { %1217 = vmatpush3.bf16.msra.mxu0 %v1214_v50 }
 0x4aa   :  { %1121 = vmatprep.mubr.msk.f32.mxu1 %vm40_vm0, %v649_v55 }
 0x4ab   :  { %1122 = vmatmul.mubr.msk.f32.vlgmr.msra.gmra.mrb[12].mxu1 %vm40_vm0, %v650_v56 }
 0x577   :  { %v1112_v57 = vpop.f32.mrb[4].mxu0 }
 0x578   :  { %v727_v58 = vpop.f32.mrb[5].mxu0 }
 0x579   :  { %1132 = vmatprep.mubr.msk.f32.mxu0 %vm40_vm0, %v727_v58 }
 0x57a   :  { %1133 = vmatmul.mubr.msk.f32.vlgmr.msra.gmra.mrb[6].mxu0 %vm40_vm0, %v1112_v57 }
 0x57e   :  { %v1123_v59 = vpop.f32.mrb[12].mxu1 }
 0x57f   :  { %v812_v60 = vpop.f32.mrb[13].mxu1 }
 0x580   :  { %1135 = vmatprep.mubr.msk.f32.mxu0 %vm40_vm0, %v812_v60 }
 0x581   :  { %1136 = vmatmul.mubr.msk.f32.gmra.mrb[8].mxu0 %vm40_vm0, %v1123_v59 }
 0x64d   :  { %v1134_v63 = vpop.f32.mrb[6].mxu0 }
 0x64e   :  { %v905_v0 = vadd.f32 %v1134_v63, %v25_v61  ;;  %v899_v1 = vpop.f32.mrb[7].mxu0 }
 0x64f   :  { %v900_v2 = vadd.f32 %v899_v1, %v24_v62 }
 0x650   :  { %919 = vst.msk [vmem:[#allocation2 + $0x8] sm:$0xff] %vm40_vm0, %v905_v0 }
 0x651   :  { %918 = vst.msk [vmem:[#allocation2] sm:$0xff] %vm40_vm0, %v900_v2 }
 0x654   :  { %v1137_v5 = vpop.f32.mrb[8].mxu0 }
 0x655   :  { %v915_v6 = vadd.f32 %v1137_v5, %v27_v3  ;;  %v909_v7 = vpop.f32.mrb[9].mxu0 }
 0x656   :  { %v910_v8 = vadd.f32 %v909_v7, %v26_v4 }
 0x657   :  { %921 = vst.msk [vmem:[#allocation2 + $0x18] sm:$0xff] %vm40_vm0, %v915_v6 }
 0x658   :  { %920 = vst.msk [vmem:[#allocation2 + $0x10] sm:$0xff] %vm40_vm0, %v910_v8 }
 0x659   :  { %1270 = shalt.err (!%p1267_p4)
}
 0x65a   :  { %s1271_s13 = scalar_lea.hbm %s1463_s2, 512 }
 0x65b   :  { %p1272_p5 = scmp.ne.s32.totalorder %s1463_s2, %s1271_s13  ;;  %p1275_p6 = scmp.lt.u32.totalorder %s1271_s13, %s1463_s2 }
 0x65d   :  { %p1277_p7 = pnand %p1275_p6, %p1272_p5 }
 0x65f   :  { %1280 = shalt.err (!%p1277_p7)
}
 0x660   :  { %s1286_s18 = smov 128   ;;  %s1287_s19 = smov 8  }
 0x661   :  { %933 = dma.vmem_to_hbm [thread:$0]  %s928_s10, 512, %s1463_s2, [#allocation3], %s1286_s18, %s1286_s18, %s1287_s19  }
 0x662   :  { %1281 = dma.done.wait [#allocation3], 512  }
 0x663   :  { %1282 = vsyncadd [#allocation3], 4294966784 }
 0x664   :  { %937 = vsyncpa [#allocation3], 1 }

</bundles_post_ra>
